<compile_context>
chip_gen: v6e
topology: v6e:2x2x1
jax: 0.10.0
libtpu: 0.0.40
codegen_flags: <defaults>
</compile_context>

<pallas_src>
import jax
import jax.numpy as jnp
from jax.experimental import pallas as pl
from jax.experimental.pallas import tpu as pltpu


_P = 32          # padded feature width (sublane rows) used for every layer
_LAT_ROW = 16    # sublane row where latent quantities (eps / mu / logvar / z) live
_OUT_RECON = 0   # output-slab row where recon starts   (rows 0..15)
_OUT_MU = 16     # output-slab row where mu starts      (rows 16..16+latent-1)
_OUT_LV = 24     # output-slab row where logvar starts  (rows 24..24+latent-1)


def _round_up(n, m):
    return ((n + m - 1) // m) * m


def _sigmoid(y):
    # sigmoid(y) == 0.5*(tanh(0.5*y)+1): one EUP push instead of exp + divide.
    return 0.5 * (jnp.tanh(0.5 * y) + 1.0)


# ---------------------------------------------------------------------------
# Pallas kernel: one batch tile (batch on the 128-lane axis) of the whole VAE.
# ---------------------------------------------------------------------------
def _vae_kernel(in_ref, w_ref, b_ref, out_ref):
    f32 = jnp.float32

    def dense(h, layer, act):
        # Constant-shape padded matmul: (32,32) @ (32,TILE_B); zero-padded
        # weight columns kill junk in padded activation rows.
        y = jnp.dot(w_ref[layer], h, preferred_element_type=f32) + b_ref[layer]
        return _sigmoid(y) if act else y

    # (32, TILE_B): rows 0..15 = x^T, rows 16..19 = eps^T, rest zero.
    x = in_ref[...].astype(f32)

    # ----- Encoder -----
    h = dense(x, 0, True)        # eps rows killed by zero cols 16..31 of W0^T
    h = dense(h, 1, True)        # rows 0..7 genuine, rows 8..31 -> sigmoid(0)=0.5 junk

    # ----- Variational heads (outputs placed at rows 16..19, zeros elsewhere) -----
    mu = dense(h, 2, False)
    lv = dense(h, 3, False)

    # ----- Reparameterization: z = eps * exp(logvar/2) + mu -----
    # Valid only at rows 16..19; the x-junk in rows 0..15 is killed by the
    # zero columns (0..15) of the layer-4 weight slab.
    z = x * jnp.exp(0.5 * lv) + mu

    # ----- Decoder -----
    d = dense(z, 4, True)
    d = dense(d, 5, True)
    recon = dense(d, 6, False)   # rows 0..15 = recon, rows 16..31 zero

    od = out_ref.dtype
    # Three 8-sublane-aligned, full-lane-width (unmasked) stores.
    out_ref[_OUT_RECON:_OUT_RECON + 16, :] = recon[0:16, :].astype(od)
    out_ref[_OUT_MU:_OUT_MU + 8, :] = mu[_LAT_ROW:_LAT_ROW + 8, :].astype(od)
    out_ref[_OUT_LV:_OUT_LV + 8, :] = lv[_LAT_ROW:_LAT_ROW + 8, :].astype(od)


# ---------------------------------------------------------------------------
# Parameter packing: 7 (w, b) pairs -> one transposed-weight slab + bias slab.
# slab[l] holds W_l^T zero-padded to (32, 32); row/col offsets place latent
# quantities at rows/cols 16..19 so no in-kernel shuffles are needed.
# (In real training this packing is done once, outside the step.)
# ---------------------------------------------------------------------------
def pack_params(params, latent_dim):
    (we1, be1), (we2, be2), (wmu, bmu), (wvar, bvar), \
        (wd0, bd0), (wd1, bd1), (wd2, bd2) = params
    assert latent_dim <= 8
    specs = [
        # (w (in,out), b, out_row_offset, in_col_offset)
        (we1, be1, 0, 0),              # enc Linear(16,32)+Sigmoid, x at rows 0..15
        (we2, be2, 0, 0),              # enc Linear(32, 8)+Sigmoid
        (wmu, bmu, _LAT_ROW, 0),       # f_mu  Linear(8,4) -> rows 16..19
        (wvar, bvar, _LAT_ROW, 0),     # f_var Linear(8,4) -> rows 16..19
        (wd0, bd0, 0, _LAT_ROW),       # dec Linear(4,8)+Sigmoid, z at rows 16..19
        (wd1, bd1, 0, 0),              # dec Linear(8,32)+Sigmoid
        (wd2, bd2, 0, 0),              # dec Linear(32,16)
    ]
    n = len(specs)
    w_slab = jnp.zeros((n, _P, _P), jnp.float32)
    b_slab = jnp.zeros((n, _P, 1), jnp.float32)
    for l, (w, b, ro, co) in enumerate(specs):
        wt = jnp.asarray(w, jnp.float32).T          # (fout, fin)
        fout, fin = wt.shape
        assert ro + fout <= _P and co + fin <= _P
        w_slab = w_slab.at[l, ro:ro + fout, co:co + fin].set(wt)
        b_slab = b_slab.at[l, ro:ro + fout, 0].set(jnp.asarray(b, jnp.float32))
    return w_slab, b_slab


# ---------------------------------------------------------------------------
# Wrapper: batch-tiled pallas_call (batch on lanes, features on sublanes).
# ---------------------------------------------------------------------------
def vae_forward(x, eps, w_slab, b_slab, *, latent_dim, d_out,
                tile_b_max=2048, io_dtype=jnp.float32):
    B, d_in = x.shape
    assert d_in <= _LAT_ROW and d_out <= _OUT_MU and latent_dim <= 8
    n_layers = w_slab.shape[0]

    # Batch tile: multiple of 128 (lane axis).  For B > 128, cap at ~ceil(B/2)
    # so the "parallel" axis has >= 2 grid steps (keeps both v7x TCs busy);
    # large cap (2048) amortizes the ~0.35us per-step overhead on v5e/v6e.
    if B <= 128:
        tile_b = 128
    else:
        tile_b = max(128, min(_round_up(pl.cdiv(B, 2), 128),
                              _round_up(tile_b_max, 128)))
    b_pad = _round_up(B, tile_b)

    # Merge x and eps into one lane-dense (feat, batch) input slab.
    xin = jnp.zeros((_P, b_pad), io_dtype)
    xin = xin.at[:d_in, :B].set(x.T.astype(io_dtype))
    xin = xin.at[_LAT_ROW:_LAT_ROW + latent_dim, :B].set(eps.T.astype(io_dtype))

    out = pl.pallas_call(
        _vae_kernel,
        out_shape=jax.ShapeDtypeStruct((_P, b_pad), io_dtype),
        grid=(b_pad // tile_b,),
        in_specs=[
            # batch-tiled, auto-pipelined (batch on lanes)
            pl.BlockSpec((_P, tile_b), lambda i: (0, i)),
            # parameters: same block every step -> stay resident in VMEM
            pl.BlockSpec((n_layers, _P, _P), lambda i: (0, 0, 0)),
            pl.BlockSpec((n_layers, _P, 1), lambda i: (0, 0, 0)),
        ],
        out_specs=pl.BlockSpec((_P, tile_b), lambda i: (0, i)),
        compiler_params=pltpu.CompilerParams(
            dimension_semantics=("parallel",)),
    )(xin, w_slab, b_slab)

    out = out.astype(jnp.float32)
    recon = out[_OUT_RECON:_OUT_RECON + d_out, :B].T.reshape(x.shape)  # .view(input_shape)
    mu = out[_OUT_MU:_OUT_MU + latent_dim, :B].T
    logvar = out[_OUT_LV:_OUT_LV + latent_dim, :B].T
    return recon, mu, logvar


# ---------------------------------------------------------------------------
# Deterministic parameter construction (synthetic weights, no checkpoint).
# ---------------------------------------------------------------------------
def init_linear(key, fan_in, fan_out):
    kw, kb = jax.random.split(key)
    bound = 1.0 / jnp.sqrt(jnp.float32(fan_in))
    # weight stored as (in, out); PyTorch stores (out, in) -- only a transpose.
    w = jax.random.uniform(kw, (fan_in, fan_out), jnp.float32, -bound, bound)
    b = jax.random.uniform(kb, (fan_out,), jnp.float32, -bound, bound)
    return w, b


def build_vae_params(key, enc_dims, dec_dims, latent_dim):
    keys = jax.random.split(key, 7)
    return [
        init_linear(keys[0], enc_dims[0], enc_dims[1]),   # Linear(16, 32) + Sigmoid
        init_linear(keys[1], enc_dims[1], enc_dims[2]),   # Linear(32, 8)  + Sigmoid
        init_linear(keys[2], enc_dims[-1], latent_dim),   # f_mu:  Linear(8, 4)
        init_linear(keys[3], enc_dims[-1], latent_dim),   # f_var: Linear(8, 4)
        init_linear(keys[4], latent_dim, dec_dims[0]),    # Linear(4, 8)   + Sigmoid
        init_linear(keys[5], dec_dims[0], dec_dims[1]),   # Linear(8, 32)  + Sigmoid
        init_linear(keys[6], dec_dims[1], dec_dims[2]),   # Linear(32, 16)
    ]


# ---------------------------------------------------------------------------
# Pure-JAX reference for correctness checks.
# ---------------------------------------------------------------------------
def vae_reference(x, eps, params):
    (we1, be1), (we2, be2), (wmu, bmu), (wvar, bvar), \
        (wd0, bd0), (wd1, bd1), (wd2, bd2) = params
    h = jax.nn.sigmoid(x @ we1 + be1)
    h = jax.nn.sigmoid(h @ we2 + be2)
    mu = h @ wmu + bmu
    logvar = h @ wvar + bvar
    z = eps * jnp.exp(logvar * 0.5) + mu
    d = jax.nn.sigmoid(z @ wd0 + bd0)
    d = jax.nn.sigmoid(d @ wd1 + bd1)
    recon = d @ wd2 + bd2
    return recon.reshape(x.shape), mu, logvar


if __name__ == "__main__":
    enc_dims = [16, 32, 8]
    dec_dims = [8, 32, 16]   # dec_dims[-1] must equal enc_dims[0] for .view()
    latent_dim = 4

    key = jax.random.PRNGKey(0)
    k_param, k_x, k_eps, k_x2, k_eps2 = jax.random.split(key, 5)

    params = build_vae_params(k_param, enc_dims, dec_dims, latent_dim)
    w_slab, b_slab = pack_params(params, latent_dim)

    # --- small demo batch (matches module spec scale) ---
    batch = 2
    x = jax.random.normal(k_x, (batch, enc_dims[0]), jnp.float32)
    eps = jax.random.normal(k_eps, (batch, latent_dim), jnp.float32)

    recon, mu, logvar = vae_forward(
        x, eps, w_slab, b_slab, latent_dim=latent_dim, d_out=dec_dims[-1])
    jax.block_until_ready((recon, mu, logvar))

    r_ref, mu_ref, lv_ref = vae_reference(x, eps, params)
    assert jnp.allclose(recon, r_ref, atol=1e-5, rtol=1e-5)
    assert jnp.allclose(mu, mu_ref, atol=1e-5, rtol=1e-5)
    assert jnp.allclose(logvar, lv_ref, atol=1e-5, rtol=1e-5)

    # --- larger, non-multiple-of-tile batch: exercises tiling + tail padding ---
    big_b = 300
    x2 = jax.random.normal(k_x2, (big_b, enc_dims[0]), jnp.float32)
    eps2 = jax.random.normal(k_eps2, (big_b, latent_dim), jnp.float32)
    recon2, mu2, lv2 = vae_forward(
        x2, eps2, w_slab, b_slab, latent_dim=latent_dim, d_out=dec_dims[-1],
        tile_b_max=128)   # force 3 grid steps of 128 lanes each
    jax.block_until_ready((recon2, mu2, lv2))
    r2_ref, mu2_ref, lv2_ref = vae_reference(x2, eps2, params)
    assert jnp.allclose(recon2, r2_ref, atol=1e-5, rtol=1e-5)
    assert jnp.allclose(mu2, mu2_ref, atol=1e-5, rtol=1e-5)
    assert jnp.allclose(lv2, lv2_ref, atol=1e-5, rtol=1e-5)

    print("KERNEL_OK")
</pallas_src>

<mosaic_0001>
module attributes {stable_mosaic.version = 11 : i64} {
  func.func @_vae_kernel(%arg0: i32, %arg1: memref<32x128xf32, #tpu.memory_space<vmem>>, %arg2: memref<7x32x32xf32, #tpu.memory_space<vmem>>, %arg3: memref<7x32x1xf32, #tpu.memory_space<vmem>>, %arg4: memref<32x128xf32, #tpu.memory_space<vmem>>) attributes {dimension_semantics = [#tpu.dimension_semantics<parallel>], iteration_bounds = array<i64: 1>, scalar_prefetch = 0 : i64, scratch_operands = 0 : i64, tpu.core_type = #tpu.core_type<tc>, window_params = [{transform_indices = @transform_0, window_bounds = array<i64: 32, 128>}, {pipeline_mode = #tpu.pipeline_mode<synchronous>, transform_indices = @transform_1, window_bounds = array<i64: 7, 32, 32>}, {pipeline_mode = #tpu.pipeline_mode<synchronous>, transform_indices = @transform_2, window_bounds = array<i64: 7, 32, 1>}, {transform_indices = @transform_3, window_bounds = array<i64: 32, 128>}]} {
    %c0 = arith.constant 0 : index
    %c0_0 = arith.constant 0 : index
    %0 = vector.load %arg1[%c0, %c0_0] : memref<32x128xf32, #tpu.memory_space<vmem>>, vector<32x128xf32>
    %c0_1 = arith.constant 0 : index
    %c0_2 = arith.constant 0 : index
    %c0_3 = arith.constant 0 : index
    %1 = vector.load %arg2[%c0_1, %c0_2, %c0_3] : memref<7x32x32xf32, #tpu.memory_space<vmem>>, vector<1x32x32xf32>
    %2 = vector.shape_cast %1 : vector<1x32x32xf32> to vector<32x32xf32>
    %cst = arith.constant dense<0.000000e+00> : vector<32x128xf32>
    %3 = tpu.matmul %2, %0, %cst {dimension_numbers = #tpu.dot_dimension_numbers<[1], [0], [0], [1], [0, 0, 1, 1], [], []>} : vector<32x32xf32>, vector<32x128xf32>, vector<32x128xf32> -> vector<32x128xf32>
    %c0_4 = arith.constant 0 : index
    %c0_5 = arith.constant 0 : index
    %c0_6 = arith.constant 0 : index
    %4 = vector.load %arg3[%c0_4, %c0_5, %c0_6] : memref<7x32x1xf32, #tpu.memory_space<vmem>>, vector<1x32x1xf32>
    %5 = vector.shape_cast %4 : vector<1x32x1xf32> to vector<32x1xf32>
    %6 = vector.broadcast %5 : vector<32x1xf32> to vector<32x128xf32>
    %7 = arith.addf %3, %6 : vector<32x128xf32>
    %cst_7 = arith.constant 5.000000e-01 : f32
    %8 = vector.broadcast %cst_7 : f32 to vector<32x128xf32>
    %9 = arith.mulf %8, %7 : vector<32x128xf32>
    %10 = math.tanh %9 : vector<32x128xf32>
    %cst_8 = arith.constant 1.000000e+00 : f32
    %11 = vector.broadcast %cst_8 : f32 to vector<32x128xf32>
    %12 = arith.addf %10, %11 : vector<32x128xf32>
    %cst_9 = arith.constant 5.000000e-01 : f32
    %13 = vector.broadcast %cst_9 : f32 to vector<32x128xf32>
    %14 = arith.mulf %13, %12 : vector<32x128xf32>
    %c1 = arith.constant 1 : index
    %c0_10 = arith.constant 0 : index
    %c0_11 = arith.constant 0 : index
    %15 = vector.load %arg2[%c1, %c0_10, %c0_11] : memref<7x32x32xf32, #tpu.memory_space<vmem>>, vector<1x32x32xf32>
    %16 = vector.shape_cast %15 : vector<1x32x32xf32> to vector<32x32xf32>
    %cst_12 = arith.constant dense<0.000000e+00> : vector<32x128xf32>
    %17 = tpu.matmul %16, %14, %cst_12 {dimension_numbers = #tpu.dot_dimension_numbers<[1], [0], [0], [1], [0, 0, 1, 1], [], []>} : vector<32x32xf32>, vector<32x128xf32>, vector<32x128xf32> -> vector<32x128xf32>
    %c1_13 = arith.constant 1 : index
    %c0_14 = arith.constant 0 : index
    %c0_15 = arith.constant 0 : index
    %18 = vector.load %arg3[%c1_13, %c0_14, %c0_15] : memref<7x32x1xf32, #tpu.memory_space<vmem>>, vector<1x32x1xf32>
    %19 = vector.shape_cast %18 : vector<1x32x1xf32> to vector<32x1xf32>
    %20 = vector.broadcast %19 : vector<32x1xf32> to vector<32x128xf32>
    %21 = arith.addf %17, %20 : vector<32x128xf32>
    %cst_16 = arith.constant 5.000000e-01 : f32
    %22 = vector.broadcast %cst_16 : f32 to vector<32x128xf32>
    %23 = arith.mulf %22, %21 : vector<32x128xf32>
    %24 = math.tanh %23 : vector<32x128xf32>
    %cst_17 = arith.constant 1.000000e+00 : f32
    %25 = vector.broadcast %cst_17 : f32 to vector<32x128xf32>
    %26 = arith.addf %24, %25 : vector<32x128xf32>
    %cst_18 = arith.constant 5.000000e-01 : f32
    %27 = vector.broadcast %cst_18 : f32 to vector<32x128xf32>
    %28 = arith.mulf %27, %26 : vector<32x128xf32>
    %c2 = arith.constant 2 : index
    %c0_19 = arith.constant 0 : index
    %c0_20 = arith.constant 0 : index
    %29 = vector.load %arg2[%c2, %c0_19, %c0_20] : memref<7x32x32xf32, #tpu.memory_space<vmem>>, vector<1x32x32xf32>
    %30 = vector.shape_cast %29 : vector<1x32x32xf32> to vector<32x32xf32>
    %cst_21 = arith.constant dense<0.000000e+00> : vector<32x128xf32>
    %31 = tpu.matmul %30, %28, %cst_21 {dimension_numbers = #tpu.dot_dimension_numbers<[1], [0], [0], [1], [0, 0, 1, 1], [], []>} : vector<32x32xf32>, vector<32x128xf32>, vector<32x128xf32> -> vector<32x128xf32>
    %c2_22 = arith.constant 2 : index
    %c0_23 = arith.constant 0 : index
    %c0_24 = arith.constant 0 : index
    %32 = vector.load %arg3[%c2_22, %c0_23, %c0_24] : memref<7x32x1xf32, #tpu.memory_space<vmem>>, vector<1x32x1xf32>
    %33 = vector.shape_cast %32 : vector<1x32x1xf32> to vector<32x1xf32>
    %34 = vector.broadcast %33 : vector<32x1xf32> to vector<32x128xf32>
    %35 = arith.addf %31, %34 : vector<32x128xf32>
    %c3 = arith.constant 3 : index
    %c0_25 = arith.constant 0 : index
    %c0_26 = arith.constant 0 : index
    %36 = vector.load %arg2[%c3, %c0_25, %c0_26] : memref<7x32x32xf32, #tpu.memory_space<vmem>>, vector<1x32x32xf32>
    %37 = vector.shape_cast %36 : vector<1x32x32xf32> to vector<32x32xf32>
    %cst_27 = arith.constant dense<0.000000e+00> : vector<32x128xf32>
    %38 = tpu.matmul %37, %28, %cst_27 {dimension_numbers = #tpu.dot_dimension_numbers<[1], [0], [0], [1], [0, 0, 1, 1], [], []>} : vector<32x32xf32>, vector<32x128xf32>, vector<32x128xf32> -> vector<32x128xf32>
    %c3_28 = arith.constant 3 : index
    %c0_29 = arith.constant 0 : index
    %c0_30 = arith.constant 0 : index
    %39 = vector.load %arg3[%c3_28, %c0_29, %c0_30] : memref<7x32x1xf32, #tpu.memory_space<vmem>>, vector<1x32x1xf32>
    %40 = vector.shape_cast %39 : vector<1x32x1xf32> to vector<32x1xf32>
    %41 = vector.broadcast %40 : vector<32x1xf32> to vector<32x128xf32>
    %42 = arith.addf %38, %41 : vector<32x128xf32>
    %cst_31 = arith.constant 5.000000e-01 : f32
    %43 = vector.broadcast %cst_31 : f32 to vector<32x128xf32>
    %44 = arith.mulf %43, %42 : vector<32x128xf32>
    %45 = math.exp %44 : vector<32x128xf32>
    %46 = arith.mulf %0, %45 : vector<32x128xf32>
    %47 = arith.addf %46, %35 : vector<32x128xf32>
    %c4 = arith.constant 4 : index
    %c0_32 = arith.constant 0 : index
    %c0_33 = arith.constant 0 : index
    %48 = vector.load %arg2[%c4, %c0_32, %c0_33] : memref<7x32x32xf32, #tpu.memory_space<vmem>>, vector<1x32x32xf32>
    %49 = vector.shape_cast %48 : vector<1x32x32xf32> to vector<32x32xf32>
    %cst_34 = arith.constant dense<0.000000e+00> : vector<32x128xf32>
    %50 = tpu.matmul %49, %47, %cst_34 {dimension_numbers = #tpu.dot_dimension_numbers<[1], [0], [0], [1], [0, 0, 1, 1], [], []>} : vector<32x32xf32>, vector<32x128xf32>, vector<32x128xf32> -> vector<32x128xf32>
    %c4_35 = arith.constant 4 : index
    %c0_36 = arith.constant 0 : index
    %c0_37 = arith.constant 0 : index
    %51 = vector.load %arg3[%c4_35, %c0_36, %c0_37] : memref<7x32x1xf32, #tpu.memory_space<vmem>>, vector<1x32x1xf32>
    %52 = vector.shape_cast %51 : vector<1x32x1xf32> to vector<32x1xf32>
    %53 = vector.broadcast %52 : vector<32x1xf32> to vector<32x128xf32>
    %54 = arith.addf %50, %53 : vector<32x128xf32>
    %cst_38 = arith.constant 5.000000e-01 : f32
    %55 = vector.broadcast %cst_38 : f32 to vector<32x128xf32>
    %56 = arith.mulf %55, %54 : vector<32x128xf32>
    %57 = math.tanh %56 : vector<32x128xf32>
    %cst_39 = arith.constant 1.000000e+00 : f32
    %58 = vector.broadcast %cst_39 : f32 to vector<32x128xf32>
    %59 = arith.addf %57, %58 : vector<32x128xf32>
    %cst_40 = arith.constant 5.000000e-01 : f32
    %60 = vector.broadcast %cst_40 : f32 to vector<32x128xf32>
    %61 = arith.mulf %60, %59 : vector<32x128xf32>
    %c5 = arith.constant 5 : index
    %c0_41 = arith.constant 0 : index
    %c0_42 = arith.constant 0 : index
    %62 = vector.load %arg2[%c5, %c0_41, %c0_42] : memref<7x32x32xf32, #tpu.memory_space<vmem>>, vector<1x32x32xf32>
    %63 = vector.shape_cast %62 : vector<1x32x32xf32> to vector<32x32xf32>
    %cst_43 = arith.constant dense<0.000000e+00> : vector<32x128xf32>
    %64 = tpu.matmul %63, %61, %cst_43 {dimension_numbers = #tpu.dot_dimension_numbers<[1], [0], [0], [1], [0, 0, 1, 1], [], []>} : vector<32x32xf32>, vector<32x128xf32>, vector<32x128xf32> -> vector<32x128xf32>
    %c5_44 = arith.constant 5 : index
    %c0_45 = arith.constant 0 : index
    %c0_46 = arith.constant 0 : index
    %65 = vector.load %arg3[%c5_44, %c0_45, %c0_46] : memref<7x32x1xf32, #tpu.memory_space<vmem>>, vector<1x32x1xf32>
    %66 = vector.shape_cast %65 : vector<1x32x1xf32> to vector<32x1xf32>
    %67 = vector.broadcast %66 : vector<32x1xf32> to vector<32x128xf32>
    %68 = arith.addf %64, %67 : vector<32x128xf32>
    %cst_47 = arith.constant 5.000000e-01 : f32
    %69 = vector.broadcast %cst_47 : f32 to vector<32x128xf32>
    %70 = arith.mulf %69, %68 : vector<32x128xf32>
    %71 = math.tanh %70 : vector<32x128xf32>
    %cst_48 = arith.constant 1.000000e+00 : f32
    %72 = vector.broadcast %cst_48 : f32 to vector<32x128xf32>
    %73 = arith.addf %71, %72 : vector<32x128xf32>
    %cst_49 = arith.constant 5.000000e-01 : f32
    %74 = vector.broadcast %cst_49 : f32 to vector<32x128xf32>
    %75 = arith.mulf %74, %73 : vector<32x128xf32>
    %c6 = arith.constant 6 : index
    %c0_50 = arith.constant 0 : index
    %c0_51 = arith.constant 0 : index
    %76 = vector.load %arg2[%c6, %c0_50, %c0_51] : memref<7x32x32xf32, #tpu.memory_space<vmem>>, vector<1x32x32xf32>
    %77 = vector.shape_cast %76 : vector<1x32x32xf32> to vector<32x32xf32>
    %cst_52 = arith.constant dense<0.000000e+00> : vector<32x128xf32>
    %78 = tpu.matmul %77, %75, %cst_52 {dimension_numbers = #tpu.dot_dimension_numbers<[1], [0], [0], [1], [0, 0, 1, 1], [], []>} : vector<32x32xf32>, vector<32x128xf32>, vector<32x128xf32> -> vector<32x128xf32>
    %c6_53 = arith.constant 6 : index
    %c0_54 = arith.constant 0 : index
    %c0_55 = arith.constant 0 : index
    %79 = vector.load %arg3[%c6_53, %c0_54, %c0_55] : memref<7x32x1xf32, #tpu.memory_space<vmem>>, vector<1x32x1xf32>
    %80 = vector.shape_cast %79 : vector<1x32x1xf32> to vector<32x1xf32>
    %81 = vector.broadcast %80 : vector<32x1xf32> to vector<32x128xf32>
    %82 = arith.addf %78, %81 : vector<32x128xf32>
    %83 = vector.extract_strided_slice %82 {offsets = [0, 0], sizes = [16, 128], strides = [1, 1]} : vector<32x128xf32> to vector<16x128xf32>
    %c0_56 = arith.constant 0 : index
    %c0_57 = arith.constant 0 : index
    %84 = vector.load %arg4[%c0_56, %c0_57] : memref<32x128xf32, #tpu.memory_space<vmem>>, vector<16x128xf32>
    tpu.vector_store %arg4[%c0_56, %c0_57], %83 {strides = array<i32>} : memref<32x128xf32, #tpu.memory_space<vmem>>, vector<16x128xf32>,
    %85 = vector.extract_strided_slice %35 {offsets = [16, 0], sizes = [8, 128], strides = [1, 1]} : vector<32x128xf32> to vector<8x128xf32>
    %c16 = arith.constant 16 : index
    %c0_58 = arith.constant 0 : index
    %86 = vector.load %arg4[%c16, %c0_58] : memref<32x128xf32, #tpu.memory_space<vmem>>, vector<8x128xf32>
    tpu.vector_store %arg4[%c16, %c0_58], %85 {strides = array<i32>} : memref<32x128xf32, #tpu.memory_space<vmem>>, vector<8x128xf32>,
    %87 = vector.extract_strided_slice %42 {offsets = [16, 0], sizes = [8, 128], strides = [1, 1]} : vector<32x128xf32> to vector<8x128xf32>
    %c24 = arith.constant 24 : index
    %c0_59 = arith.constant 0 : index
    %88 = vector.load %arg4[%c24, %c0_59] : memref<32x128xf32, #tpu.memory_space<vmem>>, vector<8x128xf32>
    tpu.vector_store %arg4[%c24, %c0_59], %87 {strides = array<i32>} : memref<32x128xf32, #tpu.memory_space<vmem>>, vector<8x128xf32>,
    return
  }
  func.func @transform_0(%arg0: i32) -> (i32, i32) {
    %c0_i32 = arith.constant 0 : i32
    %c0_i32_0 = arith.constant 0 : i32
    return %c0_i32, %arg0 : i32, i32
  }
  func.func @transform_1(%arg0: i32) -> (i32, i32, i32) {
    %c0_i32 = arith.constant 0 : i32
    %c0_i32_0 = arith.constant 0 : i32
    %c0_i32_1 = arith.constant 0 : i32
    %c0_i32_2 = arith.constant 0 : i32
    return %c0_i32, %c0_i32_0, %c0_i32_1 : i32, i32, i32
  }
  func.func @transform_2(%arg0: i32) -> (i32, i32, i32) {
    %c0_i32 = arith.constant 0 : i32
    %c0_i32_0 = arith.constant 0 : i32
    %c0_i32_1 = arith.constant 0 : i32
    %c0_i32_2 = arith.constant 0 : i32
    return %c0_i32, %c0_i32_0, %c0_i32_1 : i32, i32, i32
  }
  func.func @transform_3(%arg0: i32) -> (i32, i32) {
    %c0_i32 = arith.constant 0 : i32
    %c0_i32_0 = arith.constant 0 : i32
    return %c0_i32, %arg0 : i32, i32
  }
}

</mosaic_0001>

<bundles_post_ra>
// kernel: tpu_custom_call.1
= control target key start
LH: loop header
LB: loop body
LE: loop exit
PB: predicated region body
PF: predicated region fallthrough
CT: control target
= control target key end

     0   :  { %8 = vsyncpa [#allocation3], 0  ;;  %s1598_s0 = inlined_call_operand.hbm [shape: f32[32,128], index: 0, kind: input, shape index: {}]   ;;  %s1599_s1 = inlined_call_operand.vmem [shape: f32[7,32,32], index: 1, kind: input, shape index: {}]   ;;  %s1600_s2 = inlined_call_operand.vmem [shape: f32[7,32,1], index: 2, kind: input, shape index: {}]   ;;  %s1601_s3 = inlined_call_operand.hbm [shape: f32[32,128], index: 3, kind: output, shape index: {}]  }
   0x1   :  { %9 = vsyncpa [#allocation4], 0  ;;  %s1351_s12 = smov [#allocation2]  }
   0x2   :  { %s15_s13 = sshll.u32 %s1351_s12, 4  ;;  %s16_s13 = int_to_ptr.vmem [resolvable:$true] %s15_s13 }
   0x3   :  { %s1315_s14 = scalar_lea.vmem %s16_s13, 512  ;;  %p1320_p1 = scmp.lt.s32.totalorder %s16_s13, %s16_s13 }
   0x4   :  { %p1316_p0 = scmp.ne.s32.totalorder %s16_s13, %s1315_s14  ;;  %p1321_p2 = scmp.lt.s32.totalorder %s1315_s14, %s1315_s14 }
   0x6   :  { %p1322_p3 = por %p1321_p2, %p1320_p1 }
   0x8   :  { %p1323_p4 = pnand %p1322_p3, %p1316_p0 }
   0xa   :  { %1326 = shalt.err (!%p1323_p4)
}
   0xb   :  { %s1352_s15 = smov 128   ;;  %s1353_s16 = smov 8  }
   0xc   :  { %21 = dma.hbm_to_vmem [thread:$0]  %s1598_s0, 512, %s16_s13, [#allocation3], %s1352_s15, %s1352_s15, %s1353_s16  }
   0xd   :  { %1347 = dma.done.wait [#allocation3], 512  }
   0xe   :  { %1348 = vsyncadd [#allocation3], 4294966784  ;;  %v1354_v0 = vmov 0   ;;  %vm61_vm0 = vcmask 261120   ;;  %v1382_v1 = vld [vmem:[#allocation2 + $0x18] sm:$0xff]  ;;  %v1384_v2 = vld [vmem:[#allocation2 + $0x10] sm:$0xff] }
   0xf   :  { %1265 = vset.pattern.permute.xlu0 %v1354_v0  ;;  %1266 = vset.pattern.permute.xlu1 %v1354_v0  ;;  %v33_v3 = vld [vmem:[%s1599_s1] sm:$0xff]  ;;  %v1391_v4 = vld [vmem:[#allocation2 + $0x8] sm:$0xff]  ;;  %v40_v5 = vld [vmem:[%s1600_s2 + $0x18] sm:$0xff]  ;;  %s1355_s0 = smov [#allocation5]  }
  0x10   :  { %1154 = vmatprep.subr.mxu0 %v1382_v1  ;;  %1162 = vmatprep.mubr.msk.f32.mxu0 %vm61_vm0, %v33_v3  ;;  %v38_v6 = vld [vmem:[%s1600_s2 + $0x8] sm:$0xff]  ;;  %v1402_v7 = vld [vmem:[#allocation2] sm:$0xff]  ;;  %v39_v8 = vld [vmem:[%s1600_s2 + $0x10] sm:$0xff]  ;;  %s1010_s21 = sshll.u32 %s1355_s0, 4  ;;  %s1011_s21 = int_to_ptr.vmem [resolvable:$true] %s1010_s21 }
  0x11   :  { %1155 = vmatpush3.msra.mxu0 %v1382_v1  ;;  %58 = vperm.xlu0 %1265, %v40_v5   ;;  %v37_v9 = vld [vmem:[%s1600_s2] sm:$0xff]  ;;  %v34_v10 = vld [vmem:[%s1599_s1 + $0x8] sm:$0xff]  ;;  %v35_v11 = vld [vmem:[%s1599_s1 + $0x10] sm:$0xff]  ;;  %p1332_p6 = scmp.lt.s32.totalorder %s1011_s21, %s1011_s21 }
  0x12   :  { %1156 = vmatprep.subr.mxu0 %v1384_v2  ;;  %48 = vperm.xlu1 %1266, %v38_v6   ;;  %v1033_v12 = vld [vmem:[%s1600_s2 + $0x38] sm:$0xff]  ;;  %v1032_v13 = vld [vmem:[%s1600_s2 + $0x30] sm:$0xff]  ;;  %v1031_v15 = vld [vmem:[%s1600_s2 + $0x28] sm:$0xff] }
  0x13   :  { %1157 = vmatpush3.msra.mxu0 %v1384_v2  ;;  %v36_v14 = vld [vmem:[%s1599_s1 + $0x18] sm:$0xff]  ;;  %v1030_v16 = vld [vmem:[%s1600_s2 + $0x20] sm:$0xff]  ;;  %v1056_v18 = vld [vmem:[%s1600_s2 + $0x70] sm:$0xff] }
  0x14   :  { %1158 = vmatprep.subr.mxu0 %v1391_v4  ;;  %v1057_v17 = vld [vmem:[%s1600_s2 + $0x78] sm:$0xff]  ;;  %v1055_v19 = vld [vmem:[%s1600_s2 + $0x68] sm:$0xff]  ;;  %v1054_v20 = vld [vmem:[%s1600_s2 + $0x60] sm:$0xff] }
  0x15   :  { %1159 = vmatpush3.msra.mxu0 %v1391_v4  ;;  %53 = vperm.xlu0 %1265, %v39_v8   ;;  %v1045_v21 = vld [vmem:[%s1600_s2 + $0x58] sm:$0xff]  ;;  %v1044_v22 = vld [vmem:[%s1600_s2 + $0x50] sm:$0xff]  ;;  %v1043_v23 = vld [vmem:[%s1600_s2 + $0x48] sm:$0xff] }
  0x16   :  { %1160 = vmatprep.subr.mxu0 %v1402_v7  ;;  %43 = vperm.xlu1 %1266, %v37_v9   ;;  %v1042_v24 = vld [vmem:[%s1600_s2 + $0x40] sm:$0xff]  ;;  %v1069_v25 = vld [vmem:[%s1600_s2 + $0x98] sm:$0xff]  ;;  %v1068_v26 = vld [vmem:[%s1600_s2 + $0x90] sm:$0xff] }
  0x17   :  { %1161 = vmatpush3.msra.mxu0 %v1402_v7  ;;  %v1067_v27 = vld [vmem:[%s1600_s2 + $0x88] sm:$0xff]  ;;  %v1066_v28 = vld [vmem:[%s1600_s2 + $0x80] sm:$0xff]  ;;  %v1081_v29 = vld [vmem:[%s1600_s2 + $0xb8] sm:$0xff] }
  0x18   :  { %1163 = vmatmul.mubr.msk.f32.vlgmr.msra.gmra.mxu0 %vm61_vm0, %v34_v10  ;;  %v1080_v30 = vld [vmem:[%s1600_s2 + $0xb0] sm:$0xff]  ;;  %v1079_v31 = vld [vmem:[%s1600_s2 + $0xa8] sm:$0xff]  ;;  %v1078_v32 = vld [vmem:[%s1600_s2 + $0xa0] sm:$0xff] }
  0x19   :  { %1165 = vmatprep.mubr.msk.f32.mxu0 %vm61_vm0, %v35_v11  ;;  %202 = vperm.xlu0 %1265, %v1033_v12   ;;  %v1090_v33 = vld [vmem:[%s1600_s2 + $0xc0] sm:$0xff]  ;;  %v1091_v34 = vld [vmem:[%s1600_s2 + $0xc8] sm:$0xff]  ;;  %v1028_v3 = vld [vmem:[%s1599_s1 + $0x30] sm:$0xff] }
  0x1a   :  { %197 = vperm.xlu1 %1266, %v1032_v13   ;;  %v1026_v35 = vld [vmem:[%s1599_s1 + $0x20] sm:$0xff]  ;;  %v1027_v0 = vld [vmem:[%s1599_s1 + $0x28] sm:$0xff]  ;;  %v1029_v5 = vld [vmem:[%s1599_s1 + $0x38] sm:$0xff] }
  0x1b   :  { %1176 = vmatprep.mubr.msk.f32.mxu1 %vm61_vm0, %v1026_v35  ;;  %v1038_v6 = vld [vmem:[%s1599_s1 + $0x40] sm:$0xff] }
  0x1c   :  { %1166 = vmatmul.mubr.msk.f32.gmra.mxu0 %vm61_vm0, %v36_v14  ;;  %v1050_v8 = vld [vmem:[%s1599_s1 + $0x60] sm:$0xff] }
  0x1d   :  { %192 = vperm.xlu0 %1265, %v1031_v15   ;;  %1190 = vmatprep.mubr.msk.f32.mxu0 %vm61_vm0, %v1038_v6 }
  0x1e   :  { %187 = vperm.xlu1 %1266, %v1030_v16  }
  0x21   :  { %472 = vperm.xlu0 %1265, %v1057_v17  }
  0x22   :  { %467 = vperm.xlu1 %1266, %v1056_v18  }
  0x25   :  { %462 = vperm.xlu0 %1265, %v1055_v19  }
  0x26   :  { %457 = vperm.xlu1 %1266, %v1054_v20  }
  0x29   :  { %345 = vperm.xlu0 %1265, %v1045_v21  }
  0x2a   :  { %340 = vperm.xlu1 %1266, %v1044_v22  }
  0x2d   :  { %335 = vperm.xlu0 %1265, %v1043_v23  }
  0x2e   :  { %330 = vperm.xlu1 %1266, %v1042_v24  }
  0x31   :  { %619 = vperm.xlu0 %1265, %v1069_v25  }
  0x32   :  { %614 = vperm.xlu1 %1266, %v1068_v26  }
  0x35   :  { %609 = vperm.xlu0 %1265, %v1067_v27  }
  0x36   :  { %604 = vperm.xlu1 %1266, %v1066_v28  }
  0x39   :  { %762 = vperm.xlu0 %1265, %v1081_v29  }
  0x3a   :  { %757 = vperm.xlu1 %1266, %v1080_v30  }
  0x3d   :  { %752 = vperm.xlu0 %1265, %v1079_v31  }
  0x3e   :  { %747 = vperm.xlu1 %1266, %v1078_v32  }
  0x41   :  { %890 = vperm.xlu0 %1265, %v1090_v33  }
  0x42   :  { %895 = vperm.xlu1 %1266, %v1091_v34  }
  0x8c   :  { %v59_v37 = vpop.permute.xlu0 %58 }
  0x8d   :  { %v49_v36 = vpop.permute.xlu1 %48 }
  0x90   :  { %v54_v46 = vpop.permute.xlu0 %53 }
  0x91   :  { %v44_v40 = vpop.permute.xlu1 %43 }
  0x94   :  { %v203_v9 = vpop.permute.xlu0 %202 }
  0x95   :  { %v198_v10 = vpop.permute.xlu1 %197 }
  0x98   :  { %v193_v11 = vpop.permute.xlu0 %192 }
  0x99   :  { %v188_v14 = vpop.permute.xlu1 %187 }
  0xd8   :  { %v1164_v38 = vpop.f32.mrf.mxu0 }
  0xd9   :  { %v146_v39 = vadd.f32 %v1164_v38, %v49_v36  ;;  %v1051_v38 = vld [vmem:[%s1599_s1 + $0x68] sm:$0xff] }
  0xda   :  { %v140_v41 = vpop.f32.mrf.mxu0 }
  0xdb   :  { %v141_v42 = vadd.f32 %v140_v41, %v44_v40  ;;  %v160_v43 = vmul.f32 0.5, %v146_v39  ;;  %v1040_v39 = vld [vmem:[%s1599_s1 + $0x50] sm:$0xff]  ;;  %v1041_v41 = vld [vmem:[%s1599_s1 + $0x58] sm:$0xff] }
  0xdc   :  { %v1167_v44 = vpop.f32.mrf.mxu0  ;;  %v1052_v40 = vld [vmem:[%s1599_s1 + $0x70] sm:$0xff] }
  0xdd   :  { %v156_v45 = vadd.f32 %v1167_v44, %v59_v37  ;;  %v159_v47 = vmul.f32 0.5, %v141_v42  ;;  %1267 = vtanh.f32 %v160_v43  ;;  %v1039_v37 = vld [vmem:[%s1599_s1 + $0x48] sm:$0xff]  ;;  %v1053_v42 = vld [vmem:[%s1599_s1 + $0x78] sm:$0xff]  ;;  %v1062_v43 = vld [vmem:[%s1599_s1 + $0x80] sm:$0xff]  ;;  %v473_v44 = vpop.permute.xlu0 %472 }
  0xde   :  { %v150_v48 = vpop.f32.mrf.mxu0 }
  0xdf   :  { %v162_v49 = vmul.f32 0.5, %v156_v45  ;;  %v151_v50 = vadd.f32 %v150_v48, %v54_v46  ;;  %v468_v45 = vpop.permute.xlu1 %467 }
  0xe1   :  { %1269 = vtanh.f32 %v162_v49  ;;  %v161_v51 = vmul.f32 0.5, %v151_v50  ;;  %v463_v46 = vpop.permute.xlu0 %462 }
  0xe2   :  { %1271 = vtanh.f32 %v159_v47 }
  0xe3   :  { %1273 = vtanh.f32 %v161_v51  ;;  %v458_v47 = vpop.permute.xlu1 %457 }
  0xea   :  { %v1268_v52 = vpop.eup %1267 }
  0xeb   :  { %v168_v59 = vadd.f32 1.0, %v1268_v52 }
  0xed   :  { %v172_v62 = vmul.f32 0.5, %v168_v59 }
  0xee   :  { %v1270_v53 = vpop.eup %1269 }
  0xef   :  { %v1272_v54 = vpop.eup %1271  ;;  %v170_v55 = vadd.f32 1.0, %v1270_v53 }
  0xf0   :  { %v1274_v56 = vpop.eup %1273  ;;  %v167_v61 = vadd.f32 1.0, %v1272_v54 }
  0xf1   :  { %v174_v57 = vmul.f32 0.5, %v170_v55  ;;  %v169_v58 = vadd.f32 1.0, %v1274_v56 }
  0xf2   :  { %v171_v63 = vmul.f32 0.5, %v167_v61 }
  0xf3   :  { %1168 = vmatprep.subr.mxu1 %v174_v57  ;;  %v173_v60 = vmul.f32 0.5, %v169_v58 }
  0xf4   :  { %1169 = vmatpush3.msra.mxu1 %v174_v57  ;;  %v341_v57 = vpop.permute.xlu1 %340 }
  0xf5   :  { %1170 = vmatprep.subr.mxu1 %v173_v60 }
  0xf6   :  { %1171 = vmatpush3.msra.mxu1 %v173_v60 }
  0xf7   :  { %1172 = vmatprep.subr.mxu1 %v172_v62 }
  0xf8   :  { %1173 = vmatpush3.msra.mxu1 %v172_v62 }
  0xf9   :  { %1174 = vmatprep.subr.mxu1 %v171_v63 }
  0xfa   :  { %1175 = vmatpush3.msra.mxu1 %v171_v63 }
  0xfb   :  { %1177 = vmatmul.mubr.msk.f32.vlgmr.msra.gmra.mxu1 %vm61_vm0, %v1027_v0 }
  0xfc   :  { %1179 = vmatprep.mubr.msk.f32.mxu1 %vm61_vm0, %v1028_v3 }
  0xff   :  { %1180 = vmatmul.mubr.msk.f32.gmra.mxu1 %vm61_vm0, %v1029_v5 }
 0x100   :  { %1204 = vmatprep.mubr.msk.f32.mxu1 %vm61_vm0, %v1050_v8 }
 0x1bb   :  { %v1178_v12 = vpop.f32.mrf.mxu1 }
 0x1bc   :  { %v289_v13 = vadd.f32 %v1178_v12, %v193_v11 }
 0x1bd   :  { %v283_v15 = vpop.f32.mrf.mxu1 }
 0x1be   :  { %v284_v16 = vadd.f32 %v283_v15, %v188_v14  ;;  %v303_v17 = vmul.f32 0.5, %v289_v13 }
 0x1bf   :  { %v1181_v18 = vpop.f32.mrf.mxu1 }
 0x1c0   :  { %v299_v19 = vadd.f32 %v1181_v18, %v203_v9  ;;  %v302_v20 = vmul.f32 0.5, %v284_v16  ;;  %1275 = vtanh.f32 %v303_v17 }
 0x1c1   :  { %v293_v21 = vpop.f32.mrf.mxu1 }
 0x1c2   :  { %v305_v22 = vmul.f32 0.5, %v299_v19  ;;  %v294_v23 = vadd.f32 %v293_v21, %v198_v10  ;;  %v346_v10 = vpop.permute.xlu0 %345 }
 0x1c4   :  { %1277 = vtanh.f32 %v305_v22  ;;  %v304_v24 = vmul.f32 0.5, %v294_v23 }
 0x1c5   :  { %1279 = vtanh.f32 %v302_v20 }
 0x1c6   :  { %1281 = vtanh.f32 %v304_v24  ;;  %v336_v20 = vpop.permute.xlu0 %335  ;;  %v331_v24 = vpop.permute.xlu1 %330 }
 0x1cd   :  { %v1276_v25 = vpop.eup %1275 }
 0x1ce   :  { %v311_v30 = vadd.f32 1.0, %v1276_v25 }
 0x1d0   :  { %v315_v35 = vmul.f32 0.5, %v311_v30 }
 0x1d1   :  { %v1278_v26 = vpop.eup %1277 }
 0x1d2   :  { %v1280_v27 = vpop.eup %1279  ;;  %v313_v28 = vadd.f32 1.0, %v1278_v26 }
 0x1d3   :  { %v1282_v29 = vpop.eup %1281  ;;  %v310_v33 = vadd.f32 1.0, %v1280_v27  ;;  %v1074_v27 = vld [vmem:[%s1599_s1 + $0xa0] sm:$0xff] }
 0x1d4   :  { %v317_v31 = vmul.f32 0.5, %v313_v28  ;;  %v312_v32 = vadd.f32 1.0, %v1282_v29  ;;  %v620_v28 = vpop.permute.xlu0 %619  ;;  %v615_v29 = vpop.permute.xlu1 %614 }
 0x1d5   :  { %v314_v36 = vmul.f32 0.5, %v310_v33 }
 0x1d6   :  { %v316_v34 = vmul.f32 0.5, %v312_v32  ;;  %1182 = vmatprep.subr.mxu0 %v317_v31  ;;  %1196 = vmatprep.subr.mxu1 %v317_v31 }
 0x1d7   :  { %1183 = vmatpush3.msra.mxu0 %v317_v31  ;;  %1197 = vmatpush3.msra.mxu1 %v317_v31 }
 0x1d8   :  { %1184 = vmatprep.subr.mxu0 %v316_v34  ;;  %1198 = vmatprep.subr.mxu1 %v316_v34  ;;  %v610_v30 = vpop.permute.xlu0 %609  ;;  %v605_v33 = vpop.permute.xlu1 %604 }
 0x1d9   :  { %1185 = vmatpush3.msra.mxu0 %v316_v34  ;;  %1199 = vmatpush3.msra.mxu1 %v316_v34 }
 0x1da   :  { %1186 = vmatprep.subr.mxu0 %v315_v35  ;;  %1200 = vmatprep.subr.mxu1 %v315_v35 }
 0x1db   :  { %1187 = vmatpush3.msra.mxu0 %v315_v35  ;;  %1201 = vmatpush3.msra.mxu1 %v315_v35 }
 0x1dc   :  { %1188 = vmatprep.subr.mxu0 %v314_v36  ;;  %1202 = vmatprep.subr.mxu1 %v314_v36 }
 0x1dd   :  { %1189 = vmatpush3.msra.mxu0 %v314_v36  ;;  %1203 = vmatpush3.msra.mxu1 %v314_v36 }
 0x1de   :  { %1191 = vmatmul.mubr.msk.f32.vlgmr.msra.gmra.mxu0 %vm61_vm0, %v1039_v37  ;;  %1205 = vmatmul.mubr.msk.f32.vlgmr.msra.gmra.mxu1 %vm61_vm0, %v1051_v38 }
 0x1df   :  { %1193 = vmatprep.mubr.msk.f32.mxu0 %vm61_vm0, %v1040_v39  ;;  %1207 = vmatprep.mubr.msk.f32.mxu1 %vm61_vm0, %v1052_v40 }
 0x1e2   :  { %1194 = vmatmul.mubr.msk.f32.gmra.mxu0 %vm61_vm0, %v1041_v41  ;;  %1208 = vmatmul.mubr.msk.f32.gmra.mxu1 %vm61_vm0, %v1053_v42 }
 0x1e3   :  { %1218 = vmatprep.mubr.msk.f32.mxu0 %vm61_vm0, %v1062_v43  ;;  %1232 = vmatprep.mubr.msk.f32.mxu1 %vm61_vm0, %v1074_v27 }
 0x29e   :  { %v1192_v48 = vpop.f32.mrf.mxu0  ;;  %v1206_v49 = vpop.f32.mrf.mxu1 }
 0x29f   :  { %v559_v50 = vadd.f32 %v1206_v49, %v463_v46  ;;  %v432_v21 = vadd.f32 %v1192_v48, %v336_v20 }
 0x2a0   :  { %v426_v51 = vpop.f32.mrf.mxu0  ;;  %v553_v52 = vpop.f32.mrf.mxu1 }
 0x2a1   :  { %v554_v53 = vadd.f32 %v553_v52, %v458_v47  ;;  %v573_v54 = vmul.f32 0.5, %v559_v50  ;;  %v427_v25 = vadd.f32 %v426_v51, %v331_v24 }
 0x2a2   :  { %v1195_v55 = vpop.f32.mrf.mxu0  ;;  %v1209_v56 = vpop.f32.mrf.mxu1 }
 0x2a3   :  { %v572_v58 = vmul.f32 0.5, %v554_v53  ;;  %v569_v59 = vadd.f32 %v1209_v56, %v473_v44  ;;  %v578_v0 = vmul.f32 1.442695, %v573_v54  ;;  %v442_v13 = vadd.f32 %v1195_v55, %v346_v10  ;;  %v1075_v56 = vld [vmem:[%s1599_s1 + $0xa8] sm:$0xff] }
 0x2a4   :  { %v436_v60 = vpop.f32.mrf.mxu0  ;;  %v563_v61 = vpop.f32.mrf.mxu1 }
 0x2a5   :  { %v575_v62 = vmul.f32 0.5, %v569_v59  ;;  %v437_v63 = vadd.f32 %v436_v60, %v341_v57  ;;  %v564_v3 = vadd.f32 %v563_v61, %v468_v45  ;;  %v576_v5 = vmul.f32 1.442695, %v572_v58  ;;  %v1076_v57 = vld [vmem:[%s1599_s1 + $0xb0] sm:$0xff]  ;;  %v1077_v58 = vld [vmem:[%s1599_s1 + $0xb8] sm:$0xff]  ;;  %v1086_v59 = vld [vmem:[%s1599_s1 + $0xc0] sm:$0xff]  ;;  %v763_v61 = vpop.permute.xlu0 %762 }
 0x2a6   :  { %v1088_v60 = vld [vmem:[%s1599_s1 + $0xd0] sm:$0xff] }
 0x2a7   :  { %v582_v6 = vmul.f32 1.442695, %v575_v62  ;;  %1003 = vst [vmem:[#allocation5 + $0x10] sm:$0xff] %v437_v63  ;;  %v574_v8 = vmul.f32 0.5, %v564_v3  ;;  %1004 = vst [vmem:[#allocation5 + $0x18] sm:$0xff] %v564_v3  ;;  %v758_v62 = vpop.permute.xlu1 %757 }
 0x2a9   :  { %1283 = vpow2.f32 %v582_v6  ;;  %v580_v9 = vmul.f32 1.442695, %v574_v8 }
 0x2aa   :  { %1285 = vpow2.f32 %v578_v0 }
 0x2ab   :  { %1287 = vpow2.f32 %v576_v5  ;;  %v748_v5 = vpop.permute.xlu1 %747 }
 0x2ac   :  { %1289 = vpow2.f32 %v580_v9 }
 0x2af   :  { %v896_v27 = vpop.permute.xlu1 %895 }
 0x2b6   :  { %v1284_v11 = vpop.eup %1283 }
 0x2b7   :  { %v1286_v12 = vpop.eup %1285  ;;  %v587_v14 = vmul.f32 %v1284_v11, %v1382_v1 }
 0x2b8   :  { %v1288_v15 = vpop.eup %1287  ;;  %v585_v19 = vmul.f32 %v1286_v12, %v1391_v4  ;;  %v1064_v4 = vld [vmem:[%s1599_s1 + $0x90] sm:$0xff] }
 0x2b9   :  { %v1290_v16 = vpop.eup %1289  ;;  %v591_v17 = vadd.f32 %v587_v14, %v442_v13  ;;  %v584_v23 = vmul.f32 %v1288_v15, %v1402_v7  ;;  %v1065_v7 = vld [vmem:[%s1599_s1 + $0x98] sm:$0xff] }
 0x2ba   :  { %v586_v18 = vmul.f32 %v1290_v16, %v1384_v2  ;;  %v589_v26 = vadd.f32 %v585_v19, %v432_v21  ;;  %v1063_v2 = vld [vmem:[%s1599_s1 + $0x88] sm:$0xff] }
 0x2bb   :  { %1210 = vmatprep.subr.mxu0 %v591_v17  ;;  %v588_v1 = vadd.f32 %v584_v23, %v427_v25 }
 0x2bc   :  { %1211 = vmatpush3.msra.mxu0 %v591_v17  ;;  %v590_v22 = vadd.f32 %v586_v18, %v437_v63  ;;  %v753_v63 = vpop.permute.xlu0 %752 }
 0x2be   :  { %1212 = vmatprep.subr.mxu0 %v590_v22 }
 0x2bf   :  { %1213 = vmatpush3.msra.mxu0 %v590_v22 }
 0x2c0   :  { %1214 = vmatprep.subr.mxu0 %v589_v26 }
 0x2c1   :  { %1215 = vmatpush3.msra.mxu0 %v589_v26 }
 0x2c2   :  { %1216 = vmatprep.subr.mxu0 %v588_v1 }
 0x2c3   :  { %1217 = vmatpush3.msra.mxu0 %v588_v1 }
 0x2c4   :  { %1219 = vmatmul.mubr.msk.f32.vlgmr.msra.gmra.mxu0 %vm61_vm0, %v1063_v2 }
 0x2c5   :  { %1221 = vmatprep.mubr.msk.f32.mxu0 %vm61_vm0, %v1064_v4  ;;  %v1087_v4 = vld [vmem:[%s1599_s1 + $0xc8] sm:$0xff] }
 0x2c8   :  { %1222 = vmatmul.mubr.msk.f32.gmra.mxu0 %vm61_vm0, %v1065_v7  ;;  %v1089_v7 = vld [vmem:[%s1599_s1 + $0xd8] sm:$0xff]  ;;  %s1327_s1 = scalar_lea.vmem %s1011_s21, 512 }
 0x2c9   :  { %1246 = vmatprep.mubr.msk.f32.mxu0 %vm61_vm0, %v1086_v59  ;;  %p1328_p5 = scmp.ne.s32.totalorder %s1011_s21, %s1327_s1  ;;  %p1333_p7 = scmp.lt.s32.totalorder %s1327_s1, %s1327_s1 }
 0x2cb   :  { %p1334_p8 = por %p1333_p7, %p1332_p6 }
 0x2cd   :  { %p1335_p9 = pnand %p1334_p8, %p1328_p5 }
 0x384   :  { %v1220_v31 = vpop.f32.mrf.mxu0 }
 0x385   :  { %v706_v32 = vadd.f32 %v1220_v31, %v610_v30  ;;  %v891_v30 = vpop.permute.xlu0 %890 }
 0x386   :  { %v700_v34 = vpop.f32.mrf.mxu0 }
 0x387   :  { %v701_v35 = vadd.f32 %v700_v34, %v605_v33  ;;  %v720_v36 = vmul.f32 0.5, %v706_v32 }
 0x388   :  { %v1223_v37 = vpop.f32.mrf.mxu0 }
 0x389   :  { %v716_v38 = vadd.f32 %v1223_v37, %v620_v28  ;;  %v719_v39 = vmul.f32 0.5, %v701_v35  ;;  %1291 = vtanh.f32 %v720_v36 }
 0x38a   :  { %v710_v40 = vpop.f32.mrf.mxu0 }
 0x38b   :  { %v722_v41 = vmul.f32 0.5, %v716_v38  ;;  %v711_v42 = vadd.f32 %v710_v40, %v615_v29 }
 0x38d   :  { %1293 = vtanh.f32 %v722_v41  ;;  %v721_v43 = vmul.f32 0.5, %v711_v42 }
 0x38e   :  { %1295 = vtanh.f32 %v719_v39 }
 0x38f   :  { %1297 = vtanh.f32 %v721_v43 }
 0x396   :  { %v1292_v44 = vpop.eup %1291 }
 0x397   :  { %v728_v51 = vadd.f32 1.0, %v1292_v44 }
 0x399   :  { %v732_v54 = vmul.f32 0.5, %v728_v51 }
 0x39a   :  { %v1294_v45 = vpop.eup %1293 }
 0x39b   :  { %v1296_v46 = vpop.eup %1295  ;;  %v730_v47 = vadd.f32 1.0, %v1294_v45 }
 0x39c   :  { %v1298_v48 = vpop.eup %1297  ;;  %v727_v53 = vadd.f32 1.0, %v1296_v46 }
 0x39d   :  { %v734_v49 = vmul.f32 0.5, %v730_v47  ;;  %v729_v50 = vadd.f32 1.0, %v1298_v48 }
 0x39e   :  { %v731_v55 = vmul.f32 0.5, %v727_v53 }
 0x39f   :  { %1224 = vmatprep.subr.mxu1 %v734_v49  ;;  %v733_v52 = vmul.f32 0.5, %v729_v50 }
 0x3a0   :  { %1225 = vmatpush3.msra.mxu1 %v734_v49 }
 0x3a1   :  { %1226 = vmatprep.subr.mxu1 %v733_v52 }
 0x3a2   :  { %1227 = vmatpush3.msra.mxu1 %v733_v52 }
 0x3a3   :  { %1228 = vmatprep.subr.mxu1 %v732_v54 }
 0x3a4   :  { %1229 = vmatpush3.msra.mxu1 %v732_v54 }
 0x3a5   :  { %1230 = vmatprep.subr.mxu1 %v731_v55 }
 0x3a6   :  { %1231 = vmatpush3.msra.mxu1 %v731_v55 }
 0x3a7   :  { %1233 = vmatmul.mubr.msk.f32.vlgmr.msra.gmra.mxu1 %vm61_vm0, %v1075_v56 }
 0x3a8   :  { %1235 = vmatprep.mubr.msk.f32.mxu1 %vm61_vm0, %v1076_v57 }
 0x3ab   :  { %1236 = vmatmul.mubr.msk.f32.gmra.mxu1 %vm61_vm0, %v1077_v58 }
 0x3ac   :  { %1249 = vmatprep.mubr.msk.f32.mxu1 %vm61_vm0, %v1088_v60 }
 0x467   :  { %v1234_v0 = vpop.f32.mrf.mxu1 }
 0x468   :  { %v849_v3 = vadd.f32 %v1234_v0, %v753_v63 }
 0x469   :  { %v843_v6 = vpop.f32.mrf.mxu1 }
 0x46a   :  { %v844_v8 = vadd.f32 %v843_v6, %v748_v5  ;;  %v863_v9 = vmul.f32 0.5, %v849_v3 }
 0x46b   :  { %v1237_v10 = vpop.f32.mrf.mxu1 }
 0x46c   :  { %v859_v11 = vadd.f32 %v1237_v10, %v763_v61  ;;  %v862_v12 = vmul.f32 0.5, %v844_v8  ;;  %1299 = vtanh.f32 %v863_v9 }
 0x46d   :  { %v853_v13 = vpop.f32.mrf.mxu1 }
 0x46e   :  { %v865_v14 = vmul.f32 0.5, %v859_v11  ;;  %v854_v15 = vadd.f32 %v853_v13, %v758_v62 }
 0x470   :  { %1301 = vtanh.f32 %v865_v14  ;;  %v864_v16 = vmul.f32 0.5, %v854_v15 }
 0x471   :  { %1303 = vtanh.f32 %v862_v12 }
 0x472   :  { %1305 = vtanh.f32 %v864_v16 }
 0x479   :  { %v1300_v17 = vpop.eup %1299 }
 0x47a   :  { %v871_v22 = vadd.f32 1.0, %v1300_v17 }
 0x47c   :  { %v875_v1 = vmul.f32 0.5, %v871_v22 }
 0x47d   :  { %v1302_v18 = vpop.eup %1301 }
 0x47e   :  { %v1304_v19 = vpop.eup %1303  ;;  %v873_v20 = vadd.f32 1.0, %v1302_v18 }
 0x47f   :  { %v1306_v21 = vpop.eup %1305  ;;  %v870_v25 = vadd.f32 1.0, %v1304_v19 }
 0x480   :  { %v877_v23 = vmul.f32 0.5, %v873_v20  ;;  %v872_v24 = vadd.f32 1.0, %v1306_v21 }
 0x481   :  { %v874_v2 = vmul.f32 0.5, %v870_v25 }
 0x482   :  { %v876_v26 = vmul.f32 0.5, %v872_v24  ;;  %1238 = vmatprep.subr.mxu0 %v877_v23  ;;  %1252 = vmatprep.subr.mxu1 %v877_v23 }
 0x483   :  { %1239 = vmatpush3.msra.mxu0 %v877_v23  ;;  %1256 = vmatpush3.msra.mxu1 %v877_v23 }
 0x484   :  { %1240 = vmatprep.subr.mxu0 %v876_v26  ;;  %1253 = vmatprep.subr.mxu1 %v876_v26 }
 0x485   :  { %1241 = vmatpush3.msra.mxu0 %v876_v26  ;;  %1257 = vmatpush3.msra.mxu1 %v876_v26 }
 0x486   :  { %1242 = vmatprep.subr.mxu0 %v875_v1  ;;  %1254 = vmatprep.subr.mxu1 %v875_v1 }
 0x487   :  { %1243 = vmatpush3.msra.mxu0 %v875_v1  ;;  %1258 = vmatpush3.msra.mxu1 %v875_v1 }
 0x488   :  { %1244 = vmatprep.subr.mxu0 %v874_v2  ;;  %1255 = vmatprep.subr.mxu1 %v874_v2 }
 0x489   :  { %1245 = vmatpush3.msra.mxu0 %v874_v2  ;;  %1259 = vmatpush3.msra.mxu1 %v874_v2 }
 0x48a   :  { %1247 = vmatmul.mubr.msk.f32.vlgmr.msra.gmra.mxu0 %vm61_vm0, %v1087_v4  ;;  %1250 = vmatmul.mubr.msk.f32.vlgmr.msra.gmra.mxu1 %vm61_vm0, %v1089_v7 }
 0x54a   :  { %v1248_v28 = vpop.f32.mrf.mxu0  ;;  %v1251_v29 = vpop.f32.mrf.mxu1 }
 0x54b   :  { %v990_v31 = vadd.f32 %v1248_v28, %v896_v27 }
 0x54c   :  { %v984_v32 = vpop.f32.mrf.mxu0  ;;  %v994_v33 = vpop.f32.mrf.mxu1 }
 0x54d   :  { %1002 = vst [vmem:[#allocation5 + $0x8] sm:$0xff] %v990_v31  ;;  %v985_v34 = vadd.f32 %v984_v32, %v891_v30 }
 0x54f   :  { %1001 = vst [vmem:[#allocation5] sm:$0xff] %v985_v34 }
 0x550   :  { %1338 = shalt.err (!%p1335_p9)
}
 0x551   :  { %1016 = dma.vmem_to_hbm [thread:$0]  %s1011_s21, 512, %s1601_s3, [#allocation4], %s1352_s15, %s1352_s15, %s1353_s16  }
 0x552   :  { %1349 = dma.done.wait [#allocation4], 512  }
 0x553   :  { %1350 = vsyncadd [#allocation4], 4294966784 }
 0x554   :  { %1020 = vsyncpa [#allocation3], 1 }
 0x555   :  { %1021 = vsyncpa [#allocation4], 1 }

</bundles_post_ra>
